<compile_context>
chip_gen: v7x
topology: tpu7x:2x2x1
jax: 0.10.0
libtpu: 0.0.40
codegen_flags: <defaults>
</compile_context>

<pallas_src>
import functools

import jax
import jax.numpy as jnp
import numpy as np
from jax.experimental import pallas as pl
from jax.experimental.pallas import tpu as pltpu

KH = KW = 7
STRIDE = 2
PAD = 3
CIN = 3
COUT = 64
# Contraction length after space-to-depth: 4x4 kernel positions x (2*2*CIN)
# channels = 192 (rows for kh==7 / kw==7 are exact zeros in the repacked weight).
K2 = 4 * 4 * STRIDE * STRIDE * CIN


def _conv_s2d_kernel(x_ref, w_ref, o_ref, *, oh, ow):
    """One whole image per grid step.

    x_ref: (OH+3, OW+3, 12) f32   space-to-depth input (resident in VMEM)
    w_ref: (192, 64)        bf16  repacked weight — constant block index => DMA'd once
    o_ref: (OH*OW, 64)      bf16  output rows (NHWC, H/W flattened)
    """
    taps = []
    for kh2 in range(4):
        for kw2 in range(4):
            # Unit-stride shifted window — the stride-2 gather was folded into the
            # space-to-depth relayout done (cheaply) in the wrapper.
            taps.append(x_ref[kh2:kh2 + oh, kw2:kw2 + ow, :])
    # In-VMEM im2col: (oh, ow, 192).  Concat in f32 (most robust lane-concat
    # path), cast to bf16 only at the MXU feed.
    patch = jnp.concatenate(taps, axis=-1)
    # `ow` is padded to a multiple of 8 by the wrapper, so this merge is
    # tile-aligned (free) in the (sublane, lane) layout.
    patch = patch.reshape(oh * ow, K2).astype(jnp.bfloat16)
    acc = jnp.dot(patch, w_ref[...], preferred_element_type=jnp.float32)
    o_ref[...] = acc.astype(o_ref.dtype)


def conv7x7_s2(x_nchw, weight_oihw):
    """nn.Conv2d(3, 64, 7, stride=2, padding=3, bias=False) forward (NCHW in/out)."""
    n, cin, h, w = x_nchw.shape
    assert cin == CIN
    oh = (h + 2 * PAD - KH) // STRIDE + 1
    ow = (w + 2 * PAD - KW) // STRIDE + 1
    # Pad ow to a multiple of 8 so the in-kernel (oh, ow, K)->(oh*ow, K) merge is
    # tile-aligned; extra columns are computed over zero padding and sliced off.
    ow_p = ((ow + 7) // 8) * 8
    h2, w2 = oh + 3, ow_p + 3            # space-to-depth spatial extents
    hp, wp = 2 * h2, 2 * w2              # (even) zero-padded input extents

    # --- cheap JAX-side relayout: one input-sized pass, stays f32 --------------
    x = jnp.transpose(x_nchw, (0, 2, 3, 1))                              # NHWC
    x = jnp.pad(x, ((0, 0), (PAD, hp - h - PAD), (PAD, wp - w - PAD), (0, 0)))
    # space-to-depth by the stride; channel order (ph, pw, c)
    x = x.reshape(n, h2, 2, w2, 2, cin)
    x = jnp.transpose(x, (0, 1, 3, 2, 4, 5)).reshape(n, h2, w2, 4 * cin)

    # --- weight repack: OIHW -> [K2, 64], rows ordered (kh2, kw2, ph, pw, c) ---
    wq = jnp.pad(weight_oihw, ((0, 0), (0, 0), (0, 1), (0, 1)))          # 7x7 -> 8x8
    wq = wq.reshape(COUT, cin, 4, 2, 4, 2)                               # (co,c,kh2,ph,kw2,pw)
    wq = jnp.transpose(wq, (2, 4, 3, 5, 1, 0)).reshape(K2, COUT)
    wq = wq.astype(jnp.bfloat16)

    m = oh * ow_p
    cost = pl.CostEstimate(
        flops=2 * n * m * K2 * COUT,
        transcendentals=0,
        bytes_accessed=x.size * 4 + K2 * COUT * 2 + n * m * COUT * 2,
    )

    out = pl.pallas_call(
        functools.partial(_conv_s2d_kernel, oh=oh, ow=ow_p),
        out_shape=jax.ShapeDtypeStruct((n, m, COUT), jnp.bfloat16),
        grid_spec=pltpu.PrefetchScalarGridSpec(
            num_scalar_prefetch=0,
            grid=(n,),                                            # one image per step (>= 2 steps)
            in_specs=[
                pl.BlockSpec((None, h2, w2, 4 * cin), lambda b: (b, 0, 0, 0)),
                pl.BlockSpec((K2, COUT), lambda b: (0, 0)),       # resident shared weight
            ],
            out_specs=pl.BlockSpec((None, m, COUT), lambda b: (b, 0, 0)),
        ),
        compiler_params=pltpu.CompilerParams(
            dimension_semantics=("parallel",),       # megacore-shard images on v7x
            vmem_limit_bytes=32 * 1024 * 1024,       # headroom above v5e's 16 MiB default
        ),
        cost_estimate=cost,
    )(x, wq)

    out = out.reshape(n, oh, ow_p, COUT)
    if ow_p != ow:
        out = out[:, :, :ow, :]
    # PyTorch's conv output is channel-first; a fused downstream pipeline would
    # keep NHWC and skip this transpose.
    return jnp.transpose(out, (0, 3, 1, 2))


def two_input_net_forward(input1, input2, conv_weight):
    """Forward pass of two_input_net (the shared conv applied to both inputs)."""
    if input1.shape == input2.shape:
        # Fuse the two conv calls into a single pallas_call by batching the raw
        # inputs; the shared [192, 64] weight block is DMA'd once for both.
        nb = input1.shape[0]
        y = conv7x7_s2(jnp.concatenate([input1, input2], axis=0), conv_weight)
        x1, x2 = y[:nb], y[nb:]
    else:
        x1 = conv7x7_s2(input1, conv_weight)
        x2 = conv7x7_s2(input2, conv_weight)
    # TODO(synk): self.resnet_layer = nn.Sequential(*list(model.children())[1:-1])
    # depends on an externally supplied `model`; its architecture/weights are not
    # defined by this module, so it is not reproduced here.
    # torch.squeeze (no dim) drops all size-1 dims; jnp.squeeze matches that.
    return jnp.squeeze(x1), jnp.squeeze(x2)


if __name__ == "__main__":
    key = jax.random.PRNGKey(0)
    k1, k2, k3 = jax.random.split(key, 3)

    N, H, W = 2, 16, 16
    input1 = jax.random.normal(k1, (N, CIN, H, W), dtype=jnp.float32)
    input2 = jax.random.normal(k2, (N, CIN, H, W), dtype=jnp.float32)
    fan_in = CIN * KH * KW
    conv_weight = jax.random.normal(
        k3, (COUT, CIN, KH, KW), dtype=jnp.float32) / jnp.sqrt(fan_in)

    fwd = jax.jit(two_input_net_forward)
    x1, x2 = fwd(input1, input2, conv_weight)
    x1, x2 = jax.block_until_ready((x1, x2))

    # Sanity-check against XLA's f32 reference convolution (bf16 MXU feed +
    # bf16 output => loosened tolerance; f32 accumulation keeps error ~1e-2).
    def ref_conv(x):
        return jax.lax.conv_general_dilated(
            x, conv_weight, window_strides=(STRIDE, STRIDE),
            padding=[(PAD, PAD), (PAD, PAD)],
            dimension_numbers=("NCHW", "OIHW", "NCHW"))

    np.testing.assert_allclose(np.asarray(x1.astype(jnp.float32)),
                               np.asarray(ref_conv(input1)), rtol=3e-2, atol=3e-2)
    np.testing.assert_allclose(np.asarray(x2.astype(jnp.float32)),
                               np.asarray(ref_conv(input2)), rtol=3e-2, atol=3e-2)
    assert x1.shape == (N, COUT, H // STRIDE, W // STRIDE)
    assert x2.shape == (N, COUT, H // STRIDE, W // STRIDE)

    print("KERNEL_OK")
</pallas_src>

<mosaic_0001>
module attributes {stable_mosaic.version = 11 : i64} {
  func.func @_conv_s2d_kernel(%arg0: i32, %arg1: memref<1x11x11x12xf32, #tpu.memory_space<vmem>>, %arg2: memref<192x64xbf16, #tpu.memory_space<vmem>>, %arg3: memref<1x64x64xbf16, #tpu.memory_space<vmem>>) attributes {dimension_semantics = [#tpu.dimension_semantics<parallel>], iteration_bounds = array<i64: 4>, scalar_prefetch = 0 : i64, scratch_operands = 0 : i64, tpu.core_type = #tpu.core_type<tc>, window_params = [{transform_indices = @transform_0, window_bounds = array<i64: 1, 11, 11, 12>}, {pipeline_mode = #tpu.pipeline_mode<synchronous>, transform_indices = @transform_1, window_bounds = array<i64: 192, 64>}, {transform_indices = @transform_2, window_bounds = array<i64: 1, 64, 64>}]} {
    %c0 = arith.constant 0 : index
    %c0_0 = arith.constant 0 : index
    %c0_1 = arith.constant 0 : index
    %c0_2 = arith.constant 0 : index
    %0 = vector.load %arg1[%c0, %c0_0, %c0_1, %c0_2] : memref<1x11x11x12xf32, #tpu.memory_space<vmem>>, vector<1x8x8x12xf32>
    %1 = vector.shape_cast %0 : vector<1x8x8x12xf32> to vector<8x8x12xf32>
    %c0_3 = arith.constant 0 : index
    %c0_4 = arith.constant 0 : index
    %c1 = arith.constant 1 : index
    %c0_5 = arith.constant 0 : index
    %2 = vector.load %arg1[%c0_3, %c0_4, %c1, %c0_5] : memref<1x11x11x12xf32, #tpu.memory_space<vmem>>, vector<1x8x8x12xf32>
    %3 = vector.shape_cast %2 : vector<1x8x8x12xf32> to vector<8x8x12xf32>
    %c0_6 = arith.constant 0 : index
    %c0_7 = arith.constant 0 : index
    %c2 = arith.constant 2 : index
    %c0_8 = arith.constant 0 : index
    %4 = vector.load %arg1[%c0_6, %c0_7, %c2, %c0_8] : memref<1x11x11x12xf32, #tpu.memory_space<vmem>>, vector<1x8x8x12xf32>
    %5 = vector.shape_cast %4 : vector<1x8x8x12xf32> to vector<8x8x12xf32>
    %c0_9 = arith.constant 0 : index
    %c0_10 = arith.constant 0 : index
    %c3 = arith.constant 3 : index
    %c0_11 = arith.constant 0 : index
    %6 = vector.load %arg1[%c0_9, %c0_10, %c3, %c0_11] : memref<1x11x11x12xf32, #tpu.memory_space<vmem>>, vector<1x8x8x12xf32>
    %7 = vector.shape_cast %6 : vector<1x8x8x12xf32> to vector<8x8x12xf32>
    %c0_12 = arith.constant 0 : index
    %c1_13 = arith.constant 1 : index
    %c0_14 = arith.constant 0 : index
    %c0_15 = arith.constant 0 : index
    %8 = vector.load %arg1[%c0_12, %c1_13, %c0_14, %c0_15] : memref<1x11x11x12xf32, #tpu.memory_space<vmem>>, vector<1x8x8x12xf32>
    %9 = vector.shape_cast %8 : vector<1x8x8x12xf32> to vector<8x8x12xf32>
    %c0_16 = arith.constant 0 : index
    %c1_17 = arith.constant 1 : index
    %c1_18 = arith.constant 1 : index
    %c0_19 = arith.constant 0 : index
    %10 = vector.load %arg1[%c0_16, %c1_17, %c1_18, %c0_19] : memref<1x11x11x12xf32, #tpu.memory_space<vmem>>, vector<1x8x8x12xf32>
    %11 = vector.shape_cast %10 : vector<1x8x8x12xf32> to vector<8x8x12xf32>
    %c0_20 = arith.constant 0 : index
    %c1_21 = arith.constant 1 : index
    %c2_22 = arith.constant 2 : index
    %c0_23 = arith.constant 0 : index
    %12 = vector.load %arg1[%c0_20, %c1_21, %c2_22, %c0_23] : memref<1x11x11x12xf32, #tpu.memory_space<vmem>>, vector<1x8x8x12xf32>
    %13 = vector.shape_cast %12 : vector<1x8x8x12xf32> to vector<8x8x12xf32>
    %c0_24 = arith.constant 0 : index
    %c1_25 = arith.constant 1 : index
    %c3_26 = arith.constant 3 : index
    %c0_27 = arith.constant 0 : index
    %14 = vector.load %arg1[%c0_24, %c1_25, %c3_26, %c0_27] : memref<1x11x11x12xf32, #tpu.memory_space<vmem>>, vector<1x8x8x12xf32>
    %15 = vector.shape_cast %14 : vector<1x8x8x12xf32> to vector<8x8x12xf32>
    %c0_28 = arith.constant 0 : index
    %c2_29 = arith.constant 2 : index
    %c0_30 = arith.constant 0 : index
    %c0_31 = arith.constant 0 : index
    %16 = vector.load %arg1[%c0_28, %c2_29, %c0_30, %c0_31] : memref<1x11x11x12xf32, #tpu.memory_space<vmem>>, vector<1x8x8x12xf32>
    %17 = vector.shape_cast %16 : vector<1x8x8x12xf32> to vector<8x8x12xf32>
    %c0_32 = arith.constant 0 : index
    %c2_33 = arith.constant 2 : index
    %c1_34 = arith.constant 1 : index
    %c0_35 = arith.constant 0 : index
    %18 = vector.load %arg1[%c0_32, %c2_33, %c1_34, %c0_35] : memref<1x11x11x12xf32, #tpu.memory_space<vmem>>, vector<1x8x8x12xf32>
    %19 = vector.shape_cast %18 : vector<1x8x8x12xf32> to vector<8x8x12xf32>
    %c0_36 = arith.constant 0 : index
    %c2_37 = arith.constant 2 : index
    %c2_38 = arith.constant 2 : index
    %c0_39 = arith.constant 0 : index
    %20 = vector.load %arg1[%c0_36, %c2_37, %c2_38, %c0_39] : memref<1x11x11x12xf32, #tpu.memory_space<vmem>>, vector<1x8x8x12xf32>
    %21 = vector.shape_cast %20 : vector<1x8x8x12xf32> to vector<8x8x12xf32>
    %c0_40 = arith.constant 0 : index
    %c2_41 = arith.constant 2 : index
    %c3_42 = arith.constant 3 : index
    %c0_43 = arith.constant 0 : index
    %22 = vector.load %arg1[%c0_40, %c2_41, %c3_42, %c0_43] : memref<1x11x11x12xf32, #tpu.memory_space<vmem>>, vector<1x8x8x12xf32>
    %23 = vector.shape_cast %22 : vector<1x8x8x12xf32> to vector<8x8x12xf32>
    %c0_44 = arith.constant 0 : index
    %c3_45 = arith.constant 3 : index
    %c0_46 = arith.constant 0 : index
    %c0_47 = arith.constant 0 : index
    %24 = vector.load %arg1[%c0_44, %c3_45, %c0_46, %c0_47] : memref<1x11x11x12xf32, #tpu.memory_space<vmem>>, vector<1x8x8x12xf32>
    %25 = vector.shape_cast %24 : vector<1x8x8x12xf32> to vector<8x8x12xf32>
    %c0_48 = arith.constant 0 : index
    %c3_49 = arith.constant 3 : index
    %c1_50 = arith.constant 1 : index
    %c0_51 = arith.constant 0 : index
    %26 = vector.load %arg1[%c0_48, %c3_49, %c1_50, %c0_51] : memref<1x11x11x12xf32, #tpu.memory_space<vmem>>, vector<1x8x8x12xf32>
    %27 = vector.shape_cast %26 : vector<1x8x8x12xf32> to vector<8x8x12xf32>
    %c0_52 = arith.constant 0 : index
    %c3_53 = arith.constant 3 : index
    %c2_54 = arith.constant 2 : index
    %c0_55 = arith.constant 0 : index
    %28 = vector.load %arg1[%c0_52, %c3_53, %c2_54, %c0_55] : memref<1x11x11x12xf32, #tpu.memory_space<vmem>>, vector<1x8x8x12xf32>
    %29 = vector.shape_cast %28 : vector<1x8x8x12xf32> to vector<8x8x12xf32>
    %c0_56 = arith.constant 0 : index
    %c3_57 = arith.constant 3 : index
    %c3_58 = arith.constant 3 : index
    %c0_59 = arith.constant 0 : index
    %30 = vector.load %arg1[%c0_56, %c3_57, %c3_58, %c0_59] : memref<1x11x11x12xf32, #tpu.memory_space<vmem>>, vector<1x8x8x12xf32>
    %31 = vector.shape_cast %30 : vector<1x8x8x12xf32> to vector<8x8x12xf32>
    %32 = tpu.concatenate %1, %3, %5, %7, %9, %11, %13, %15, %17, %19, %21, %23, %25, %27, %29, %31 in 2 : vector<8x8x12xf32>, vector<8x8x12xf32>, vector<8x8x12xf32>, vector<8x8x12xf32>, vector<8x8x12xf32>, vector<8x8x12xf32>, vector<8x8x12xf32>, vector<8x8x12xf32>, vector<8x8x12xf32>, vector<8x8x12xf32>, vector<8x8x12xf32>, vector<8x8x12xf32>, vector<8x8x12xf32>, vector<8x8x12xf32>, vector<8x8x12xf32>, vector<8x8x12xf32> -> vector<8x8x192xf32>
    %33 = vector.shape_cast %32 : vector<8x8x192xf32> to vector<64x192xf32>
    %34 = arith.truncf %33 : vector<64x192xf32> to vector<64x192xbf16>
    %c0_60 = arith.constant 0 : index
    %c0_61 = arith.constant 0 : index
    %35 = vector.load %arg2[%c0_60, %c0_61] : memref<192x64xbf16, #tpu.memory_space<vmem>>, vector<192x64xbf16>
    %cst = arith.constant dense<0.000000e+00> : vector<64x64xf32>
    %36 = tpu.matmul %34, %35, %cst {dimension_numbers = #tpu.dot_dimension_numbers<[1], [0], [0], [1], [0, 0, 1, 1], [], []>} : vector<64x192xbf16>, vector<192x64xbf16>, vector<64x64xf32> -> vector<64x64xf32>
    %37 = arith.truncf %36 : vector<64x64xf32> to vector<64x64xbf16>
    %c0_62 = arith.constant 0 : index
    %c0_63 = arith.constant 0 : index
    %c0_64 = arith.constant 0 : index
    %38 = vector.load %arg3[%c0_62, %c0_63, %c0_64] : memref<1x64x64xbf16, #tpu.memory_space<vmem>>, vector<1x64x64xbf16>
    %39 = vector.shape_cast %38 : vector<1x64x64xbf16> to vector<64x64xbf16>
    %40 = vector.shape_cast %37 : vector<64x64xbf16> to vector<1x64x64xbf16>
    tpu.vector_store %arg3[%c0_62, %c0_63, %c0_64], %40 {strides = array<i32>} : memref<1x64x64xbf16, #tpu.memory_space<vmem>>, vector<1x64x64xbf16>,
    return
  }
  func.func @transform_0(%arg0: i32) -> (i32, i32, i32, i32) {
    %c0_i32 = arith.constant 0 : i32
    %c0_i32_0 = arith.constant 0 : i32
    %c0_i32_1 = arith.constant 0 : i32
    %c0_i32_2 = arith.constant 0 : i32
    return %arg0, %c0_i32, %c0_i32_0, %c0_i32_1 : i32, i32, i32, i32
  }
  func.func @transform_1(%arg0: i32) -> (i32, i32) {
    %c0_i32 = arith.constant 0 : i32
    %c0_i32_0 = arith.constant 0 : i32
    %c0_i32_1 = arith.constant 0 : i32
    return %c0_i32, %c0_i32_0 : i32, i32
  }
  func.func @transform_2(%arg0: i32) -> (i32, i32, i32) {
    %c0_i32 = arith.constant 0 : i32
    %c0_i32_0 = arith.constant 0 : i32
    %c0_i32_1 = arith.constant 0 : i32
    return %arg0, %c0_i32, %c0_i32_0 : i32, i32, i32
  }
}

</mosaic_0001>

<bundles_post_ra>
// kernel: two_input_net_forward.1
= control target key start
LH: loop header
LB: loop body
LE: loop exit
PB: predicated region body
PF: predicated region fallthrough
CT: control target
= control target key end

     0   :  { %s1708_s9 = smov 0   ;;  %s2341_s0 = inlined_call_operand.vmem [shape: f32[4,11,11,12], index: 0, kind: input, shape index: {}]   ;;  %s2342_s1 = inlined_call_operand.vmem [shape: bf16[192,64], index: 1, kind: input, shape index: {}]   ;;  %s2343_s2 = inlined_call_operand.vmem [shape: bf16[4,64,64], index: 2, kind: output, shape index: {}]  }
   0x1 LB: > { %s1169_s10 = sadd.s32 4294967295, %s1675_s9   ;;  %p1173_p0 = scmp.ge.s32.totalorder %s1675_s9, 1  ;;  %s1675_s9 = sphi %s1708_s9, %s12_s9  }
   0x2   : > { %p112_p1 = scmp.lt.s32.totalorder %s1675_s9, 5 }
   0x4   : > { %p113_p2 = pnand %p1173_p0, %p112_p1 }
   0x5   : > { %p134_p3 = scmp.lt.s32.totalorder (!%p113_p2), %s1169_s10, 3  ;;  %s1677_s15 = smov (!%p113_p2), 24   ;;  %v1680_v31 = vmov (!%p113_p2), 0   ;;  %v1657_v35 = vld [vmem:[%s2342_s1] sm:$0xff] (!%p113_p2)   ;;  %v1658_v39 = vld [vmem:[%s2342_s1 + $0x8] sm:$0xff] (!%p113_p2)   ;;  %v1659_v45 = vld [vmem:[%s2342_s1 + $0x10] sm:$0xff] (!%p113_p2)  }
   0x6   : > { %116 = sbr.rel (%p113_p2) target bundleno = 475 (0x1db), region = 28  ;;  %s1678_s16 = smov (!%p113_p2), 12   ;;  %1008 = vmatprep.subr.bf16.mxu0 (!%p113_p2), %v1680_v31  ;;  %1308 = vmatprep.subr.bf16.mxu1 (!%p113_p2), %v1680_v31  ;;  %v1660_v50 = vld [vmem:[%s2342_s1 + $0x18] sm:$0xff] (!%p113_p2)   ;;  %v1661_v54 = vld [vmem:[%s2342_s1 + $0x20] sm:$0xff] (!%p113_p2)   ;;  %v1662_v59 = vld [vmem:[%s2342_s1 + $0x28] sm:$0xff] (!%p113_p2)   ;;  %vm756_vm0 = vcmask (!%p113_p2), 97280  }
   0x7   : > { %s1679_s17 = smov (!%p113_p2), 36   ;;  %s1681_s20 = smov (!%p113_p2), 48   ;;  %1009 = vmatpush1.bf16.msra.mxu0 (!%p113_p2), %v1657_v35  ;;  %1320 = vmatpush1.bf16.msra.mxu1 (!%p113_p2), %v1657_v35  ;;  %v1663_v63 = vld [vmem:[%s2342_s1 + $0x30] sm:$0xff] (!%p113_p2)   ;;  %vm765_vm1 = vcmask (!%p113_p2), 195584   ;;  %vm774_vm2 = vcmask (!%p113_p2), 293888   ;;  %vm783_vm3 = vcmask (!%p113_p2), 392192  }
   0x8   : > { %1010 = vmatprep.subr.bf16.mxu0 (!%p113_p2), %v1680_v31  ;;  %1309 = vmatprep.subr.bf16.mxu1 (!%p113_p2), %v1680_v31  ;;  %s1682_s23 = smov (!%p113_p2), 60   ;;  %s1683_s26 = smov (!%p113_p2), 120   ;;  %vm792_vm4 = vcmask (!%p113_p2), 490496   ;;  %vm846_vm5 = vcmask (!%p113_p2), 31744   ;;  %vm801_vm6 = vcmask (!%p113_p2), 588800   ;;  %vm855_vm7 = vcmask (!%p113_p2), 130048  }
   0x9   : > { %s1684_s29 = smov (!%p113_p2), 4   ;;  %s1685_s4 = smov (!%p113_p2), 72   ;;  %vm810_vm8 = vcmask (!%p113_p2), 687104   ;;  %vm864_vm9 = vcmask (!%p113_p2), 228352   ;;  %vm819_vm10 = vcmask (!%p113_p2), 785408   ;;  %vm828_vm11 = vcmask (!%p113_p2), 883712  }
   0xa   : > { %s1686_s7 = smov (!%p113_p2), 16   ;;  %s1687_s12 = smov (!%p113_p2), 84   ;;  %vm873_vm12 = vcmask (!%p113_p2), 326656   ;;  %vm837_vm13 = vcmask (!%p113_p2), 982016   ;;  %vm882_vm14 = vcmask (!%p113_p2), 424960   ;;  %vm995_vm15 = vcmask (!%p113_p2), 523264  }
   0xb   : > { %1011 = vmatpush1.bf16.msra.mxu0 (!%p113_p2), %v1658_v39  ;;  %1321 = vmatpush1.bf16.msra.mxu1 (!%p113_p2), %v1658_v39  ;;  %s1688_s19 = smov (!%p113_p2), 28   ;;  %s1689_s24 = smov (!%p113_p2), 96  }
   0xc   : > { %1012 = vmatprep.subr.bf16.mxu0 (!%p113_p2), %v1680_v31  ;;  %1310 = vmatprep.subr.bf16.mxu1 (!%p113_p2), %v1680_v31  ;;  %s1690_s28 = smov (!%p113_p2), 40   ;;  %s1691_s8 = smov (!%p113_p2), 108  }
   0xd   : > { %s2345_s10 = smov (!%p134_p3, %s1169_s10), 3 }
   0xe   : > { %s1332_s11 = smul.u32 176, %s2345_s10 }
   0xf   : > { %1013 = vmatpush1.bf16.msra.mxu0 %v1659_v45  ;;  %1322 = vmatpush1.bf16.msra.mxu1 %v1659_v45 }
  0x10   : > { %s1722_s14 = scalar_lea.vmem %s2341_s0, %s1332_s11  ;;  %1014 = vmatprep.subr.bf16.mxu0 %v1680_v31  ;;  %1311 = vmatprep.subr.bf16.mxu1 %v1680_v31 }
  0x11   : > { %v161_v0 = vld [vmem:[%s1722_s14 + $0x2] sm:$0xff]  ;;  %v1726_v1 = vld [vmem:[%s1722_s14 + $0x12] sm:$0xff] }
  0x12   : > { %v153_v2 = vld [vmem:[%s1722_s14 + $0x1] sm:$0xff]  ;;  %v1367_v3 = vpack.i.bf16 %v1726_v1, %v161_v0  ;;  %v154_v4 = vld [vmem:[%s1722_s14 + $0x11] sm:$0xff] }
  0x13   : > { %v1732_v5 = vld [vmem:[%s1722_s14 + $0x42] sm:$0xff]  ;;  %v1735_v6 = vld [vmem:[%s1722_s14 + $0x52] sm:$0xff]  ;;  %v1357_v7 = vpack.i.bf16 %v154_v4, %v153_v2  ;;  %1015 = vmatpush1.bf16.msra.mxu0 %v1660_v50  ;;  %1323 = vmatpush1.bf16.msra.mxu1 %v1660_v50 }
  0x14   : > { %v1738_v8 = vld [vmem:[%s1722_s14 + $0x41] sm:$0xff]  ;;  %v158_v9 = vld [vmem:[%s1722_s14 + $0x51] sm:$0xff]  ;;  %1368 = vrot.lane.b32.xlu1 %v1367_v3, %s1677_s15  ;;  %v1744_v10 = vpack.i.bf16 %v1735_v6, %v1732_v5  ;;  %1016 = vmatprep.subr.bf16.mxu0 %v1680_v31 }
  0x15   : > { %1358 = vrot.lane.b32.xlu0 %v1357_v7, %s1678_s16  ;;  %v1748_v11 = vpack.i.bf16 %v158_v9, %v1738_v8  ;;  %v1751_v12 = vld [vmem:[%s1722_s14 + $0x43] sm:$0xff]  ;;  %v1754_v13 = vld [vmem:[%s1722_s14 + $0x53] sm:$0xff]  ;;  %1312 = vmatprep.subr.bf16.mxu1 %v1680_v31 }
  0x16   : > { %v169_v14 = vld [vmem:[%s1722_s14 + $0x3] sm:$0xff]  ;;  %v1758_v15 = vld [vmem:[%s1722_s14 + $0x13] sm:$0xff]  ;;  %v1764_v16 = vpack.i.bf16 %v1754_v13, %v1751_v12 }
  0x17   : > { %v1377_v17 = vpack.i.bf16 %v1758_v15, %v169_v14  ;;  %v1770_v18 = vld [vmem:[%s1722_s14 + $0x50] sm:$0xff]  ;;  %v1773_v19 = vld [vmem:[%s1722_s14 + $0x60] sm:$0xff]  ;;  %1017 = vmatpush1.bf16.msra.mxu0 %v1661_v54  ;;  %1324 = vmatpush1.bf16.msra.mxu1 %v1661_v54  ;;  %v1664_v3 = vld [vmem:[%s2342_s1 + $0x38] sm:$0xff]  }
  0x18   : > { %1373 = vrot.lane.b32.xlu1 %v1744_v10, %s1677_s15  ;;  %v1776_v20 = vld [vmem:[%s1722_s14 + $0x10] sm:$0xff]  ;;  %v1779_v21 = vld [vmem:[%s1722_s14 + $0x20] sm:$0xff]  ;;  %v1785_v22 = vpack.i.bf16 %v1773_v19, %v1770_v18  ;;  %1018 = vmatprep.subr.bf16.mxu0 %v1680_v31  ;;  %v1666_v14 = vld [vmem:[%s2342_s1 + $0x48] sm:$0xff]  }
  0x19   : > { %1363 = vrot.lane.b32.xlu0 %v1748_v11, %s1678_s16  ;;  %v1387_v23 = vpack.i.bf16 %v1779_v21, %v1776_v20  ;;  %v1791_v24 = vld [vmem:[%s1722_s14 + $0x61] sm:$0xff]  ;;  %v1797_v26 = vld [vmem:[%s1722_s14 + $0x90] sm:$0xff]  ;;  %1313 = vmatprep.subr.bf16.mxu1 %v1680_v31 }
  0x1a   : > { %v1794_v25 = vld [vmem:[%s1722_s14 + $0x80] sm:$0xff]  ;;  %v1806_v29 = vld [vmem:[%s1722_s14 + $0x91] sm:$0xff]  ;;  %v1824_v36 = vpack.i.bf16 %v1791_v24, %v158_v9 }
  0x1b   : > { %v1800_v27 = vld [vmem:[%s1722_s14 + $0x21] sm:$0xff]  ;;  %v1622_v30 = vpack.i.bf16 %v1797_v26, %v1794_v25  ;;  %v1814_v33 = vld [vmem:[%s1722_s14 + $0x72] sm:$0xff]  ;;  %1019 = vmatpush1.bf16.msra.mxu0 %v1662_v59  ;;  %1325 = vmatpush1.bf16.msra.mxu1 %v1662_v59 }
  0x1c   : > { %1383 = vrot.lane.b32.xlu1 %v1764_v16, %s1679_s17  ;;  %v1803_v28 = vld [vmem:[%s1722_s14 + $0x81] sm:$0xff]  ;;  %v1397_v38 = vpack.i.bf16 %v1800_v27, %v154_v4  ;;  %v1833_v40 = vld [vmem:[%s1722_s14 + $0x32] sm:$0xff]  ;;  %1020 = vmatprep.subr.bf16.mxu0 %v1680_v31 }
  0x1d   : > { %1378 = vrot.lane.b32.xlu0 %v1377_v17, %s1679_s17  ;;  %v1229_v32 = vld [vmem:[%s1722_s14 + $0x62] sm:$0xff]  ;;  %v1642_v34 = vpack.i.bf16 %v1806_v29, %v1803_v28  ;;  %v1848_v44 = vld [vmem:[%s1722_s14 + $0x73] sm:$0xff]  ;;  %1314 = vmatprep.subr.bf16.mxu1 %v1680_v31 }
  0x1e   : > { %v1225_v37 = vld [vmem:[%s1722_s14 + $0x22] sm:$0xff]  ;;  %v1840_v41 = vpack.i.bf16 %v1814_v33, %v1229_v32  ;;  %v1855_v47 = vld [vmem:[%s1722_s14 + $0x33] sm:$0xff]  ;;  %v1877_v51 = vpack.i.bf16 %v1229_v32, %v1735_v6 }
  0x1f   : > { %v1844_v42 = vpack.i.bf16 %v1833_v40, %v1225_v37  ;;  %v1237_v43 = vld [vmem:[%s1722_s14 + $0x63] sm:$0xff]  ;;  %v1427_v52 = vpack.i.bf16 %v1225_v37, %v1726_v1  ;;  %v1883_v53 = vld [vmem:[%s1722_s14 + $0x70] sm:$0xff]  ;;  %1021 = vmatpush1.bf16.msra.mxu0 %v1663_v63  ;;  %1326 = vmatpush1.bf16.msra.mxu1 %v1663_v63  ;;  %v1507_v32 = vpack.i.bf16 %v1751_v12, %v1855_v47 }
  0x20   : > { %1393 = vrot.lane.b32.xlu1 %v1785_v22, %s1681_s20  ;;  %v1233_v46 = vld [vmem:[%s1722_s14 + $0x23] sm:$0xff]  ;;  %v1862_v48 = vpack.i.bf16 %v1848_v44, %v1237_v43  ;;  %v1889_v55 = vld [vmem:[%s1722_s14 + $0x30] sm:$0xff]  ;;  %v1900_v57 = vpack.i.bf16 %v1794_v25, %v1883_v53  ;;  %v1915_v60 = vpack.i.bf16 %v1237_v43, %v1754_v13  ;;  %1022 = vmatprep.subr.bf16.mxu0 %v1680_v31 }
  0x21   : > { %1388 = vrot.lane.b32.xlu0 %v1387_v23, %s1681_s20  ;;  %v1867_v49 = vpack.i.bf16 %v1855_v47, %v1233_v46  ;;  %v1892_v56 = vld [vmem:[%s1722_s14 + $0x40] sm:$0xff]  ;;  %v1447_v61 = vpack.i.bf16 %v1233_v46, %v1758_v15  ;;  %v1253_v62 = vld [vmem:[%s1722_s14 + $0x71] sm:$0xff]  ;;  %1315 = vmatprep.subr.bf16.mxu1 %v1680_v31  ;;  %v1472_v4 = vpack.i.bf16 %v1883_v53, %v1773_v19 }
  0x22   : > { %v1905_v58 = vpack.i.bf16 %v1892_v56, %v1889_v55  ;;  %v1249_v0 = vld [vmem:[%s1722_s14 + $0x31] sm:$0xff]  ;;  %v1930_v1 = vpack.i.bf16 %v1803_v28, %v1253_v62  ;;  %v1467_v6 = vpack.i.bf16 %v1889_v55, %v1779_v21  ;;  %v1262_v7 = vld [vmem:[%s1722_s14 + $0x82] sm:$0xff]  ;;  %v1477_v13 = vpack.i.bf16 %v1732_v5, %v1833_v40 }
  0x23   : > { %v1934_v2 = vpack.i.bf16 %v1738_v8, %v1249_v0  ;;  %1023 = vmatpush1.bf16.msra.mxu0 %v1664_v3  ;;  %v1665_v8 = vld [vmem:[%s2342_s1 + $0x40] sm:$0xff]   ;;  %1327 = vmatpush1.bf16.msra.mxu1 %v1664_v3  ;;  %v1482_v9 = vpack.i.bf16 %v1262_v7, %v1814_v33  ;;  %v1492_v15 = vpack.i.bf16 %v1253_v62, %v1791_v24  ;;  %v1667_v17 = vld [vmem:[%s2342_s1 + $0x50] sm:$0xff]   ;;  %v1668_v24 = vld [vmem:[%s2342_s1 + $0x58] sm:$0xff]  }
  0x24   : > { %1403 = vrot.lane.b32.xlu1 %v1824_v36, %s1682_s23  ;;  %1024 = vmatprep.subr.bf16.mxu0 %v1680_v31  ;;  %v1487_v5 = vpack.i.bf16 %v1249_v0, %v1800_v27  ;;  %v1270_v23 = vld [vmem:[%s1722_s14 + $0x83] sm:$0xff]  ;;  %v1232_v12 = vld [vmem:[%s1722_s14 + $0x92] sm:$0xff] }
  0x25   : > { %1398 = vrot.lane.b32.xlu0 %v1397_v38, %s1682_s23  ;;  %1316 = vmatprep.subr.bf16.mxu1 %v1680_v31  ;;  %v1512_v27 = vpack.i.bf16 %v1270_v23, %v1848_v44  ;;  %v1240_v33 = vld [vmem:[%s1722_s14 + $0x93] sm:$0xff]  ;;  %v1248_v37 = vld [vmem:[%s1722_s14 + $0xa0] sm:$0xff] }
  0x26   : > { %v1572_v35 = vpack.i.bf16 %v1240_v33, %v1270_v23  ;;  %v1592_v38 = vpack.i.bf16 %v1248_v37, %v1797_v26  ;;  %v1264_v40 = vld [vmem:[%s1722_s14 + $0xa2] sm:$0xff] }
  0x27   : > { %1025 = vmatpush1.bf16.msra.mxu0 %v1665_v8  ;;  %1328 = vmatpush1.bf16.msra.mxu1 %v1665_v8 }
  0x28   : > { %1413 = vrot.lane.b32.xlu1 %v1840_v41, %s1683_s26  ;;  %1026 = vmatprep.subr.bf16.mxu0 %v1680_v31 }
  0x29   : > { %1408 = vrot.lane.b32.xlu0 %v1844_v42, %s1683_s26  ;;  %1317 = vmatprep.subr.bf16.mxu1 %v1680_v31 }
  0x2b   : > { %1027 = vmatpush1.bf16.msra.mxu0 %v1666_v14  ;;  %1329 = vmatpush1.bf16.msra.mxu1 %v1666_v14 }
  0x2c   : > { %1423 = vrot.lane.b32.xlu1 %v1862_v48, %s1684_s29  ;;  %1028 = vmatprep.subr.bf16.mxu0 %v1680_v31 }
  0x2d   : > { %1418 = vrot.lane.b32.xlu0 %v1867_v49, %s1684_s29  ;;  %1318 = vmatprep.subr.bf16.mxu1 %v1680_v31 }
  0x2f   : > { %1029 = vmatpush1.bf16.msra.mxu0 %v1667_v17  ;;  %1330 = vmatpush1.bf16.msra.mxu1 %v1667_v17 }
  0x30   : > { %1433 = vrot.lane.b32.xlu1 %v1877_v51, %s1685_s4  ;;  %1030 = vmatprep.subr.bf16.mxu0 %v1680_v31 }
  0x31   : > { %1428 = vrot.lane.b32.xlu0 %v1427_v52, %s1685_s4  ;;  %1319 = vmatprep.subr.bf16.mxu1 %v1680_v31  ;;  %v1562_v31 = vpack.i.bf16 %v1232_v12, %v1262_v7 }
  0x33   : > { %1031 = vmatpush1.bf16.msra.mxu0 %v1668_v24  ;;  %1331 = vmatpush1.bf16.msra.mxu1 %v1668_v24 }
  0x34   : > { %1443 = vrot.lane.b32.xlu1 %v1900_v57, %s1686_s7 }
  0x35   : > { %1438 = vrot.lane.b32.xlu0 %v1905_v58, %s1686_s7 }
  0x38   : > { %1453 = vrot.lane.b32.xlu1 %v1915_v60, %s1687_s12 }
  0x39   : > { %1448 = vrot.lane.b32.xlu0 %v1447_v61, %s1687_s12 }
  0x3c   : > { %1463 = vrot.lane.b32.xlu1 %v1930_v1, %s1688_s19 }
  0x3d   : > { %1458 = vrot.lane.b32.xlu0 %v1934_v2, %s1688_s19 }
  0x40   : > { %1473 = vrot.lane.b32.xlu1 %v1472_v4, %s1689_s24 }
  0x41   : > { %1468 = vrot.lane.b32.xlu0 %v1467_v6, %s1689_s24 }
  0x44   : > { %1483 = vrot.lane.b32.xlu1 %v1482_v9, %s1690_s28 }
  0x45   : > { %1478 = vrot.lane.b32.xlu0 %v1477_v13, %s1690_s28 }
  0x48   : > { %1493 = vrot.lane.b32.xlu1 %v1492_v15, %s1678_s16 }
  0x49   : > { %1488 = vrot.lane.b32.xlu0 %v1487_v5, %s1678_s16  ;;  %s1692_s16 = smov 52  }
  0x4c   : > { %1503 = vrot.lane.b32.xlu1 %v1492_v15, %s1691_s8 }
  0x4d   : > { %1498 = vrot.lane.b32.xlu0 %v1487_v5, %s1691_s8 }
  0x50   : > { %1513 = vrot.lane.b32.xlu1 %v1512_v27, %s1692_s16 }
  0x51   : > { %1508 = vrot.lane.b32.xlu0 %v1507_v32, %s1692_s16 }
  0x54   : > { %1523 = vrot.lane.b32.xlu1 %v1840_v41, %s1677_s15  ;;  %v1272_v41 = vld [vmem:[%s1722_s14 + $0xa3] sm:$0xff] }
  0x55   : > { %1518 = vrot.lane.b32.xlu0 %v1844_v42, %s1677_s15 }
  0x58   : > { %1533 = vrot.lane.b32.xlu1 %v1862_v48, %s1679_s17 }
  0x59   : > { %1528 = vrot.lane.b32.xlu0 %v1867_v49, %s1679_s17 }
  0x5c   : > { %1543 = vrot.lane.b32.xlu1 %v1900_v57, %s1681_s20  ;;  %v145_v57 = vld [vmem:[%s1722_s14] sm:$0xff] }
  0x5d   : > { %1538 = vrot.lane.b32.xlu0 %v1905_v58, %s1681_s20 }
  0x60   : > { %1553 = vrot.lane.b32.xlu1 %v1930_v1, %s1682_s23 }
  0x61   : > { %1548 = vrot.lane.b32.xlu0 %v1934_v2, %s1682_s23 }
  0x64   : > { %1563 = vrot.lane.b32.xlu1 %v1562_v31, %s1683_s26 }
  0x65   : > { %1558 = vrot.lane.b32.xlu0 %v1744_v10, %s1683_s26  ;;  %v1256_v10 = vld [vmem:[%s1722_s14 + $0xa1] sm:$0xff]  ;;  %s1299_s14 = sshll.u32 %s2345_s10, 5 }
  0x66   : > { %v1612_v39 = vpack.i.bf16 %v1256_v10, %v1806_v29  ;;  %s2320_s20 = scalar_lea.vmem %s2343_s2, %s1299_s14 }
  0x68   : > { %1573 = vrot.lane.b32.xlu1 %v1572_v35, %s1684_s29 }
  0x69   : > { %1568 = vrot.lane.b32.xlu0 %v1764_v16, %s1684_s29  ;;  %v1617_v16 = vpack.i.bf16 %v1770_v18, %v1892_v56 }
  0x6c   : > { %1583 = vrot.lane.b32.xlu1 %v1482_v9, %s1685_s4 }
  0x6d   : > { %1578 = vrot.lane.b32.xlu0 %v1477_v13, %s1685_s4 }
  0x70   : > { %1593 = vrot.lane.b32.xlu1 %v1592_v38, %s1686_s7 }
  0x71   : > { %1588 = vrot.lane.b32.xlu0 %v1785_v22, %s1686_s7  ;;  %v1632_v22 = vpack.i.bf16 %v1264_v40, %v1232_v12 }
  0x74   : > { %1603 = vrot.lane.b32.xlu1 %v1512_v27, %s1687_s12 }
  0x75   : > { %1598 = vrot.lane.b32.xlu0 %v1507_v32, %s1687_s12 }
  0x78   : > { %1613 = vrot.lane.b32.xlu1 %v1612_v39, %s1688_s19 }
  0x79   : > { %1608 = vrot.lane.b32.xlu0 %v1824_v36, %s1688_s19  ;;  %v1652_v36 = vpack.i.bf16 %v1272_v41, %v1240_v33 }
  0x7c   : > { %1623 = vrot.lane.b32.xlu1 %v1622_v30, %s1689_s24 }
  0x7d   : > { %1618 = vrot.lane.b32.xlu0 %v1617_v16, %s1689_s24 }
  0x80   : > { %1633 = vrot.lane.b32.xlu1 %v1632_v22, %s1690_s28 }
  0x81   : > { %1628 = vrot.lane.b32.xlu0 %v1877_v51, %s1690_s28 }
  0x84   : > { %1643 = vrot.lane.b32.xlu1 %v1642_v34, %s1691_s8 }
  0x85   : > { %1638 = vrot.lane.b32.xlu0 %v1748_v11, %s1691_s8 }
  0x86   : > { %v1369_v25 = vpop.permute.xlu1 %1368 }
  0x87   : > { %v1359_v26 = vpop.permute.xlu0 %1358  ;;  %v1371_v61 = vunpack.i.h.bf16 %v1369_v25  ;;  %v1370_v62 = vunpack.i.l.bf16 %v1369_v25 }
  0x88   : > { %1653 = vrot.lane.b32.xlu1 %v1652_v36, %s1692_s16  ;;  %v1361_v51 = vunpack.i.h.bf16 %v1359_v26  ;;  %v1360_v52 = vunpack.i.l.bf16 %v1359_v26 }
  0x89   : > { %1648 = vrot.lane.b32.xlu0 %v1915_v60, %s1692_s16 }
  0x8a   : > { %v1374_v30 = vpop.permute.xlu1 %1373  ;;  %v757_v63 = vsel %vm756_vm0, %v145_v57, %v1360_v52  ;;  %v758_v0 = vsel %vm756_vm0, %v1776_v20, %v1361_v51 }
  0x8b   : > { %v1364_v42 = vpop.permute.xlu0 %1363  ;;  %v1376_v1 = vunpack.i.h.bf16 %v1374_v30  ;;  %v1375_v2 = vunpack.i.l.bf16 %v1374_v30  ;;  %v766_v20 = vsel %vm765_vm1, %v757_v63, %v1370_v62  ;;  %v767_v17 = vsel %vm765_vm1, %v758_v0, %v1371_v61 }
  0x8c   : > { %v1366_v58 = vunpack.i.h.bf16 %v1364_v42  ;;  %v1365_v59 = vunpack.i.l.bf16 %v1364_v42 }
  0x8e   : > { %v1384_v43 = vpop.permute.xlu1 %1383  ;;  %v761_v4 = vsel %vm756_vm0, %v1892_v56, %v1365_v59  ;;  %v762_v6 = vsel %vm756_vm0, %v1770_v18, %v1366_v58 }
  0x8f   : > { %v1379_v44 = vpop.permute.xlu0 %1378  ;;  %v1386_v7 = vunpack.i.h.bf16 %v1384_v43  ;;  %v1385_v8 = vunpack.i.l.bf16 %v1384_v43  ;;  %v770_v56 = vsel %vm765_vm1, %v761_v4, %v1375_v2  ;;  %v771_v27 = vsel %vm765_vm1, %v762_v6, %v1376_v1 }
  0x90   : > { %v1381_v13 = vunpack.i.h.bf16 %v1379_v44  ;;  %v1380_v14 = vunpack.i.l.bf16 %v1379_v44 }
  0x91   : > { %v779_v31 = vsel %vm774_vm2, %v770_v56, %v1385_v8  ;;  %v780_v33 = vsel %vm774_vm2, %v771_v27, %v1386_v7 }
  0x92   : > { %v1394_v45 = vpop.permute.xlu1 %1393  ;;  %v775_v10 = vsel %vm774_vm2, %v766_v20, %v1380_v14  ;;  %v776_v39 = vsel %vm774_vm2, %v767_v17, %v1381_v13 }
  0x93   : > { %v1389_v46 = vpop.permute.xlu0 %1388  ;;  %v1396_v15 = vunpack.i.h.bf16 %v1394_v45  ;;  %v1395_v5 = vunpack.i.l.bf16 %v1394_v45 }
  0x94   : > { %v1391_v23 = vunpack.i.h.bf16 %v1389_v46  ;;  %v1390_v24 = vunpack.i.l.bf16 %v1389_v46 }
  0x95   : > { %v788_v16 = vsel %vm783_vm3, %v779_v31, %v1395_v5  ;;  %v789_v40 = vsel %vm783_vm3, %v780_v33, %v1396_v15 }
  0x96   : > { %v2048_v28 = vpop.permute.xlu1 %1403  ;;  %v784_v22 = vsel %vm783_vm3, %v775_v10, %v1390_v24  ;;  %v785_v41 = vsel %vm783_vm3, %v776_v39, %v1391_v23 }
  0x97   : > { %v2050_v29 = vpop.permute.xlu0 %1398  ;;  %v1406_v18 = vunpack.i.h.bf16 %v2048_v28  ;;  %v1405_v32 = vunpack.i.l.bf16 %v2048_v28 }
  0x98   : > { %v1401_v35 = vunpack.i.h.bf16 %v2050_v29  ;;  %v1400_v37 = vunpack.i.l.bf16 %v2050_v29 }
  0x99   : > { %v797_v26 = vsel %vm792_vm4, %v788_v16, %v1405_v32  ;;  %v798_v30 = vsel %vm792_vm4, %v789_v40, %v1406_v18 }
  0x9a   : > { %v2052_v34 = vpop.permute.xlu1 %1413  ;;  %v793_v45 = vsel %vm792_vm4, %v784_v22, %v1400_v37  ;;  %v794_v46 = vsel %vm792_vm4, %v785_v41, %v1401_v35 }
  0x9b   : > { %v2054_v11 = vpop.permute.xlu0 %1408  ;;  %v1416_v28 = vunpack.i.h.bf16 %v2052_v34  ;;  %v1415_v29 = vunpack.i.l.bf16 %v2052_v34 }
  0x9c   : > { %v1411_v51 = vunpack.i.h.bf16 %v2054_v11  ;;  %v1410_v52 = vunpack.i.l.bf16 %v2054_v11 }
  0x9e   : > { %v2056_v47 = vpop.permute.xlu1 %1423 }
  0x9f   : > { %v2058_v48 = vpop.permute.xlu0 %1418  ;;  %v1426_v36 = vunpack.i.h.bf16 %v2056_v47  ;;  %v1425_v25 = vunpack.i.l.bf16 %v2056_v47 }
  0xa0   : > { %v1421_v42 = vunpack.i.h.bf16 %v2058_v48  ;;  %v1420_v43 = vunpack.i.l.bf16 %v2058_v48 }
  0xa1   : > { %v851_v58 = vsel %vm846_vm5, %v1415_v29, %v1425_v25  ;;  %v852_v59 = vsel %vm846_vm5, %v1416_v28, %v1426_v36 }
  0xa2   : > { %v2060_v49 = vpop.permute.xlu1 %1433  ;;  %v847_v63 = vsel %vm846_vm5, %v1410_v52, %v1420_v43 }
  0xa3   : > { %v2062_v50 = vpop.permute.xlu0 %1428  ;;  %v1436_v57 = vunpack.i.h.bf16 %v2060_v49  ;;  %v1435_v48 = vunpack.i.l.bf16 %v2060_v49  ;;  %v848_v49 = vsel %vm846_vm5, %v1411_v51, %v1421_v42 }
  0xa4   : > { %v1431_v61 = vunpack.i.h.bf16 %v2062_v50  ;;  %v1430_v62 = vunpack.i.l.bf16 %v2062_v50 }
  0xa5   : > { %v806_v13 = vsel %vm801_vm6, %v797_v26, %v1435_v48  ;;  %v807_v14 = vsel %vm801_vm6, %v798_v30, %v1436_v57 }
  0xa6   : > { %v2064_v54 = vpop.permute.xlu1 %1443  ;;  %v802_v5 = vsel %vm801_vm6, %v793_v45, %v1430_v62  ;;  %v803_v20 = vsel %vm801_vm6, %v794_v46, %v1431_v61 }
  0xa7   : > { %v2067_v60 = vpop.permute.xlu0 %1438  ;;  %v1446_v0 = vunpack.i.h.bf16 %v2064_v54  ;;  %v1445_v1 = vunpack.i.l.bf16 %v2064_v54 }
  0xa8   : > { %v1441_v4 = vunpack.i.h.bf16 %v2067_v60  ;;  %v1440_v6 = vunpack.i.l.bf16 %v2067_v60 }
  0xa9   : > { %v861_v23 = vsel %vm855_vm7, %v852_v59, %v1446_v0 }
  0xaa   : > { %v2072_v3 = vpop.permute.xlu1 %1453  ;;  %v857_v18 = vsel %vm855_vm7, %v848_v49, %v1441_v4 }
  0xab   : > { %v2078_v9 = vpop.permute.xlu0 %1448  ;;  %v1456_v50 = vunpack.i.h.bf16 %v2072_v3  ;;  %v1455_v7 = vunpack.i.l.bf16 %v2072_v3  ;;  %v860_v3 = vsel %vm855_vm7, %v851_v58, %v1445_v1 }
  0xac   : > { %v1451_v15 = vunpack.i.h.bf16 %v2078_v9  ;;  %v1450_v54 = vunpack.i.l.bf16 %v2078_v9  ;;  %v856_v9 = vsel %vm855_vm7, %v847_v63, %v1440_v6 }
  0xad   : > { %v815_v32 = vsel %vm810_vm8, %v806_v13, %v1455_v7 }
  0xae   : > { %v2086_v12 = vpop.permute.xlu1 %1463  ;;  %v811_v33 = vsel %vm810_vm8, %v802_v5, %v1450_v54  ;;  %v812_v35 = vsel %vm810_vm8, %v803_v20, %v1451_v15 }
  0xaf   : > { %v2092_v38 = vpop.permute.xlu0 %1458  ;;  %v1466_v60 = vunpack.i.h.bf16 %v2086_v12  ;;  %v1465_v17 = vunpack.i.l.bf16 %v2086_v12  ;;  %v816_v12 = vsel %vm810_vm8, %v807_v14, %v1456_v50 }
  0xb0   : > { %v1461_v24 = vunpack.i.h.bf16 %v2092_v38  ;;  %v1460_v56 = vunpack.i.l.bf16 %v2092_v38 }
  0xb1   : > { %v869_v10 = vsel %vm864_vm9, %v860_v3, %v1465_v17  ;;  %v870_v39 = vsel %vm864_vm9, %v861_v23, %v1466_v60 }
  0xb2   : > { %v2106_v44 = vpop.permute.xlu1 %1473  ;;  %v865_v22 = vsel %vm864_vm9, %v856_v9, %v1460_v56  ;;  %v866_v41 = vsel %vm864_vm9, %v857_v18, %v1461_v24 }
  0xb3   : > { %v2112_v47 = vpop.permute.xlu0 %1468  ;;  %v1476_v37 = vunpack.i.h.bf16 %v2106_v44  ;;  %v1475_v38 = vunpack.i.l.bf16 %v2106_v44 }
  0xb4   : > { %v1471_v16 = vunpack.i.h.bf16 %v2112_v47  ;;  %v1470_v40 = vunpack.i.l.bf16 %v2112_v47 }
  0xb5   : > { %v824_v46 = vsel %vm819_vm10, %v815_v32, %v1475_v38  ;;  %v825_v57 = vsel %vm819_vm10, %v816_v12, %v1476_v37 }
  0xb6   : > { %v1484_v2 = vpop.permute.xlu1 %1483  ;;  %v820_v47 = vsel %vm819_vm10, %v811_v33, %v1470_v40  ;;  %v821_v59 = vsel %vm819_vm10, %v812_v35, %v1471_v16 }
  0xb7   : > { %v1479_v8 = vpop.permute.xlu0 %1478  ;;  %v1486_v36 = vunpack.i.h.bf16 %v1484_v2  ;;  %v1485_v25 = vunpack.i.l.bf16 %v1484_v2 }
  0xb8   : > { %v1481_v30 = vunpack.i.h.bf16 %v1479_v8  ;;  %v1480_v42 = vunpack.i.l.bf16 %v1479_v8 }
  0xb9   : > { %v878_v1 = vsel %vm873_vm12, %v869_v10, %v1485_v25  ;;  %v879_v2 = vsel %vm873_vm12, %v870_v39, %v1486_v36 }
  0xba   : > { %v2150_v27 = vpop.permute.xlu1 %1493  ;;  %v874_v7 = vsel %vm873_vm12, %v865_v22, %v1480_v42  ;;  %v875_v8 = vsel %vm873_vm12, %v866_v41, %v1481_v30 }
  0xbb   : > { %v2156_v31 = vpop.permute.xlu0 %1488  ;;  %v1496_v10 = vunpack.i.h.bf16 %v2150_v27  ;;  %v1495_v39 = vunpack.i.l.bf16 %v2150_v27 }
  0xbc   : > { %v1491_v40 = vunpack.i.h.bf16 %v2156_v31  ;;  %v1490_v22 = vunpack.i.l.bf16 %v2156_v31 }
  0xbd   : > { %v764_v30 = vsel %vm756_vm0, %v1883_v53, %v1496_v10 }
  0xbe   : > { %v1504_v26 = vpop.permute.xlu1 %1503  ;;  %v759_v27 = vsel %vm756_vm0, %v1779_v21, %v1490_v22  ;;  %v760_v31 = vsel %vm756_vm0, %v1889_v55, %v1491_v40 }
  0xbf   : > { %v1506_v43 = vunpack.i.h.bf16 %v1504_v26  ;;  %v1505_v44 = vunpack.i.l.bf16 %v1504_v26  ;;  %v1499_v45 = vpop.permute.xlu0 %1498  ;;  %v763_v26 = vsel %vm756_vm0, %v1773_v19, %v1495_v39  ;;  %vm1105_vm0 = vcmask 519168  }
  0xc0   : > { %v1501_v48 = vunpack.i.h.bf16 %v1499_v45  ;;  %v1500_v58 = vunpack.i.l.bf16 %v1499_v45 }
  0xc1   : > { %v833_v61 = vsel %vm828_vm11, %v824_v46, %v1505_v44  ;;  %v834_v62 = vsel %vm828_vm11, %v825_v57, %v1506_v43 }
  0xc2   : > { %v829_v63 = vsel %vm828_vm11, %v820_v47, %v1500_v58  ;;  %v830_v49 = vsel %vm828_vm11, %v821_v59, %v1501_v48  ;;  %v1514_v0 = vpop.permute.xlu1 %1513  ;;  %v842_v15 = vsel %vm837_vm13, %v833_v61, %v1415_v29  ;;  %v843_v54 = vsel %vm837_vm13, %v834_v62, %v1416_v28 }
  0xc3   : > { %v1516_v4 = vunpack.i.h.bf16 %v1514_v0  ;;  %v1515_v6 = vunpack.i.l.bf16 %v1514_v0  ;;  %v1509_v50 = vpop.permute.xlu0 %1508  ;;  %v838_v60 = vsel %vm837_vm13, %v829_v63, %v1410_v52  ;;  %v839_v17 = vsel %vm837_vm13, %v830_v49, %v1411_v51 }
  0xc4   : > { %v1511_v13 = vunpack.i.h.bf16 %v1509_v50  ;;  %v1510_v14 = vunpack.i.l.bf16 %v1509_v50  ;;  %v895_v56 = vpack.c.bf16 %v843_v54, %v842_v15  ;;  %v891_v9 = vpack.c.bf16 %v839_v17, %v838_v60 }
  0xc5   : > { %v887_v5 = vsel %vm882_vm14, %v878_v1, %v1515_v6  ;;  %v888_v20 = vsel %vm882_vm14, %v879_v2, %v1516_v4 }
  0xc6   : > { %v1524_v3 = vpop.permute.xlu1 %1523  ;;  %v883_v23 = vsel %vm882_vm14, %v874_v7, %v1510_v14  ;;  %v884_v29 = vsel %vm882_vm14, %v875_v8, %v1511_v13  ;;  %v896_v34 = vpack.c.bf16 %v888_v20, %v887_v5 }
  0xc7   : > { %v1519_v24 = vpop.permute.xlu0 %1518  ;;  %v892_v28 = vpack.c.bf16 %v884_v29, %v883_v23  ;;  %v1526_v36 = vunpack.i.h.bf16 %v1524_v3  ;;  %v1525_v25 = vunpack.i.l.bf16 %v1524_v3 }
  0xc8   : > { %1287 = vmatprep.mubr.msk.bf16.mxu1 %vm995_vm15, %v896_v34  ;;  %v1521_v42 = vunpack.i.h.bf16 %v1519_v24  ;;  %v1520_v43 = vunpack.i.l.bf16 %v1519_v24 }
  0xc9   : > { %1285 = vmatprep.mubr.msk.bf16.mxu0 %vm995_vm15, %v892_v28  ;;  %1057 = vmatmul.mubr.bf16.vlgmr.msra.gmra.mrb[0].mxu1 %v895_v56  ;;  %v772_v53 = vsel %vm765_vm1, %v763_v26, %v1525_v25  ;;  %v773_v59 = vsel %vm765_vm1, %v764_v30, %v1526_v36 }
  0xca   : > { %1041 = vmatmul.mubr.bf16.vlgmr.msra.gmra.mrb[0].mxu0 %v891_v9  ;;  %v1534_v52 = vpop.permute.xlu1 %1533  ;;  %v768_v63 = vsel %vm765_vm1, %v759_v27, %v1520_v43  ;;  %v769_v21 = vsel %vm765_vm1, %v760_v31, %v1521_v42 }
  0xcb   : > { %v1529_v11 = vpop.permute.xlu0 %1528  ;;  %v1536_v45 = vunpack.i.h.bf16 %v1534_v52  ;;  %v1535_v46 = vunpack.i.l.bf16 %v1534_v52 }
  0xcc   : > { %v1531_v48 = vunpack.i.h.bf16 %v1529_v11  ;;  %v1530_v58 = vunpack.i.l.bf16 %v1529_v11 }
  0xcd   : > { %v781_v1 = vsel %vm774_vm2, %v772_v53, %v1535_v46  ;;  %v782_v2 = vsel %vm774_vm2, %v773_v59, %v1536_v45 }
  0xce   : > { %v1544_v18 = vpop.permute.xlu1 %1543  ;;  %v777_v7 = vsel %vm774_vm2, %v768_v63, %v1530_v58  ;;  %v778_v8 = vsel %vm774_vm2, %v769_v21, %v1531_v48 }
  0xcf   : > { %v1539_v51 = vpop.permute.xlu0 %1538  ;;  %v1546_v19 = vunpack.i.h.bf16 %v1544_v18  ;;  %v1545_v47 = vunpack.i.l.bf16 %v1544_v18 }
  0xd0   : > { %v1541_v61 = vunpack.i.h.bf16 %v1539_v51  ;;  %v1540_v62 = vunpack.i.l.bf16 %v1539_v51 }
  0xd1   : > { %v790_v13 = vsel %vm783_vm3, %v781_v1, %v1545_v47  ;;  %v791_v14 = vsel %vm783_vm3, %v782_v2, %v1546_v19 }
  0xd2   : > { %v1554_v32 = vpop.permute.xlu1 %1553  ;;  %v786_v15 = vsel %vm783_vm3, %v777_v7, %v1540_v62  ;;  %v787_v54 = vsel %vm783_vm3, %v778_v8, %v1541_v61 }
  0xd3   : > { %v1549_v12 = vpop.permute.xlu0 %1548  ;;  %v1556_v49 = vunpack.i.h.bf16 %v1554_v32  ;;  %v1555_v55 = vunpack.i.l.bf16 %v1554_v32 }
  0xd4   : > { %v1551_v4 = vunpack.i.h.bf16 %v1549_v12  ;;  %v1550_v6 = vunpack.i.l.bf16 %v1549_v12 }
  0xd5   : > { %v799_v60 = vsel %vm792_vm4, %v790_v13, %v1555_v55  ;;  %v800_v17 = vsel %vm792_vm4, %v791_v14, %v1556_v49 }
  0xd6   : > { %v2198_v33 = vpop.permute.xlu1 %1563  ;;  %v795_v34 = vsel %vm792_vm4, %v786_v15, %v1550_v6  ;;  %v796_v24 = vsel %vm792_vm4, %v787_v54, %v1551_v4 }
  0xd7   : > { %v2200_v35 = vpop.permute.xlu0 %1558  ;;  %v1566_v28 = vunpack.i.h.bf16 %v2198_v33  ;;  %v1565_v56 = vunpack.i.l.bf16 %v2198_v33 }
  0xd8   : > { %v1561_v52 = vunpack.i.h.bf16 %v2200_v35  ;;  %v1560_v11 = vunpack.i.l.bf16 %v2200_v35 }
  0xda   : > { %v2202_v37 = vpop.permute.xlu1 %1573 }
  0xdb   : > { %v2204_v38 = vpop.permute.xlu0 %1568  ;;  %v1576_v5 = vunpack.i.h.bf16 %v2202_v37  ;;  %v1575_v20 = vunpack.i.l.bf16 %v2202_v37 }
  0xdc   : > { %v1571_v3 = vunpack.i.h.bf16 %v2204_v38  ;;  %v1570_v23 = vunpack.i.l.bf16 %v2204_v38 }
  0xdd   : > { %v853_v32 = vsel %vm846_vm5, %v1565_v56, %v1575_v20  ;;  %v854_v12 = vsel %vm846_vm5, %v1566_v28, %v1576_v5 }
  0xde   : > { %v2208_v16 = vpop.permute.xlu1 %1583  ;;  %v849_v10 = vsel %vm846_vm5, %v1560_v11, %v1570_v23  ;;  %v850_v39 = vsel %vm846_vm5, %v1561_v52, %v1571_v3 }
  0xdf   : > { %v2212_v41 = vpop.permute.xlu0 %1578  ;;  %v1586_v18 = vunpack.i.h.bf16 %v2208_v16  ;;  %v1585_v51 = vunpack.i.l.bf16 %v2208_v16 }
  0xe0   : > { %v1581_v37 = vunpack.i.h.bf16 %v2212_v41  ;;  %v1580_v38 = vunpack.i.l.bf16 %v2212_v41 }
  0xe1   : > { %v808_v42 = vsel %vm801_vm6, %v799_v60, %v1585_v51  ;;  %v809_v43 = vsel %vm801_vm6, %v800_v17, %v1586_v18 }
  0xe2   : > { %v2218_v44 = vpop.permute.xlu1 %1593  ;;  %v804_v45 = vsel %vm801_vm6, %v795_v34, %v1580_v38  ;;  %v805_v46 = vsel %vm801_vm6, %v796_v24, %v1581_v37 }
  0xe3   : > { %v2224_v57 = vpop.permute.xlu0 %1588  ;;  %v1596_v16 = vunpack.i.h.bf16 %v2218_v44  ;;  %v1595_v40 = vunpack.i.l.bf16 %v2218_v44 }
  0xe4   : > { %v1591_v36 = vunpack.i.h.bf16 %v2224_v57  ;;  %v1590_v25 = vunpack.i.l.bf16 %v2224_v57 }
  0xe5   : > { %v862_v58 = vsel %vm855_vm7, %v853_v32, %v1595_v40  ;;  %v863_v19 = vsel %vm855_vm7, %v854_v12, %v1596_v16 }
  0xe6   : > { %v1604_v0 = vpop.permute.xlu1 %1603  ;;  %v858_v59 = vsel %vm855_vm7, %v849_v10, %v1590_v25  ;;  %v859_v61 = vsel %vm855_vm7, %v850_v39, %v1591_v36 }
  0xe7   : > { %v1599_v50 = vpop.permute.xlu0 %1598  ;;  %v1606_v26 = vunpack.i.h.bf16 %v1604_v0  ;;  %v1605_v30 = vunpack.i.l.bf16 %v1604_v0 }
  0xe8   : > { %v1601_v27 = vunpack.i.h.bf16 %v1599_v50  ;;  %v1600_v31 = vunpack.i.l.bf16 %v1599_v50 }
  0xe9   : > { %v817_v62 = vsel %vm810_vm8, %v808_v42, %v1605_v30  ;;  %v818_v63 = vsel %vm810_vm8, %v809_v43, %v1606_v26 }
  0xea   : > { %v1614_v29 = vpop.permute.xlu1 %1613  ;;  %v813_v49 = vsel %vm810_vm8, %v804_v45, %v1600_v31  ;;  %v814_v55 = vsel %vm810_vm8, %v805_v46, %v1601_v27 }
  0xeb   : > { %v1609_v9 = vpop.permute.xlu0 %1608  ;;  %v1616_v48 = vunpack.i.h.bf16 %v1614_v29  ;;  %v1615_v44 = vunpack.i.l.bf16 %v1614_v29 }
  0xec   : > { %v1611_v57 = vunpack.i.h.bf16 %v1609_v9  ;;  %v1610_v47 = vunpack.i.l.bf16 %v1609_v9 }
  0xed   : > { %v871_v2 = vsel %vm864_vm9, %v862_v58, %v1615_v44  ;;  %v872_v4 = vsel %vm864_vm9, %v863_v19, %v1616_v48 }
  0xee   : > { %v1624_v22 = vpop.permute.xlu1 %1623  ;;  %v867_v7 = vsel %vm864_vm9, %v858_v59, %v1610_v47  ;;  %v868_v8 = vsel %vm864_vm9, %v859_v61, %v1611_v57 }
  0xef   : > { %v1619_v41 = vpop.permute.xlu0 %1618  ;;  %v1626_v0 = vunpack.i.h.bf16 %v1624_v22  ;;  %v1625_v1 = vunpack.i.l.bf16 %v1624_v22 }
  0xf0   : > { %v1621_v6 = vunpack.i.h.bf16 %v1619_v41  ;;  %v1620_v50 = vunpack.i.l.bf16 %v1619_v41 }
  0xf1   : > { %v826_v3 = vsel %vm819_vm10, %v817_v62, %v1625_v1  ;;  %v827_v23 = vsel %vm819_vm10, %v818_v63, %v1626_v0 }
  0xf2   : > { %v1634_v53 = vpop.permute.xlu1 %1633  ;;  %v822_v24 = vsel %vm819_vm10, %v813_v49, %v1620_v50  ;;  %v823_v9 = vsel %vm819_vm10, %v814_v55, %v1621_v6 }
  0xf3   : > { %v1629_v21 = vpop.permute.xlu0 %1628  ;;  %v1636_v13 = vunpack.i.h.bf16 %v1634_v53  ;;  %v1635_v14 = vunpack.i.l.bf16 %v1634_v53 }
  0xf4   : > { %v1631_v54 = vunpack.i.h.bf16 %v1629_v21  ;;  %v1630_v5 = vunpack.i.l.bf16 %v1629_v21 }
  0xf5   : > { %v880_v32 = vsel %vm873_vm12, %v871_v2, %v1635_v14  ;;  %v881_v12 = vsel %vm873_vm12, %v872_v4, %v1636_v13 }
  0xf6   : > { %v1644_v15 = vpop.permute.xlu1 %1643  ;;  %v876_v39 = vsel %vm873_vm12, %v867_v7, %v1630_v5  ;;  %v877_v16 = vsel %vm873_vm12, %v868_v8, %v1631_v54 }
  0xf7   : > { %v1646_v20 = vunpack.i.h.bf16 %v1644_v15  ;;  %v1645_v60 = vunpack.i.l.bf16 %v1644_v15  ;;  %v1639_v17 = vpop.permute.xlu0 %1638 }
  0xf8   : > { %v1641_v29 = vunpack.i.h.bf16 %v1639_v17  ;;  %v1640_v34 = vunpack.i.l.bf16 %v1639_v17 }
  0xf9   : > { %v835_v18 = vsel %vm828_vm11, %v826_v3, %v1645_v60  ;;  %v836_v51 = vsel %vm828_vm11, %v827_v23, %v1646_v20 }
  0xfa   : > { %v831_v37 = vsel %vm828_vm11, %v822_v24, %v1640_v34  ;;  %v832_v38 = vsel %vm828_vm11, %v823_v9, %v1641_v29  ;;  %v1654_v10 = vpop.permute.xlu1 %1653  ;;  %v844_v30 = vsel %vm837_vm13, %v835_v18, %v1565_v56  ;;  %v845_v41 = vsel %vm837_vm13, %v836_v51, %v1566_v28 }
  0xfb   : > { %v1656_v40 = vunpack.i.h.bf16 %v1654_v10  ;;  %v1655_v22 = vunpack.i.l.bf16 %v1654_v10  ;;  %v1649_v36 = vpop.permute.xlu0 %1648  ;;  %v840_v27 = vsel %vm837_vm13, %v831_v37, %v1560_v11  ;;  %v841_v31 = vsel %vm837_vm13, %v832_v38, %v1561_v52 }
  0xfc   : > { %v1651_v25 = vunpack.i.h.bf16 %v1649_v36  ;;  %v1650_v26 = vunpack.i.l.bf16 %v1649_v36  ;;  %v897_v48 = vpack.c.bf16 %v845_v41, %v844_v30  ;;  %v893_v28 = vpack.c.bf16 %v841_v31, %v840_v27 }
  0xfd   : > { %v889_v42 = vsel %vm882_vm14, %v880_v32, %v1655_v22  ;;  %v890_v43 = vsel %vm882_vm14, %v881_v12, %v1656_v40 }
  0xfe   : > { %v898_v45 = vpack.c.bf16 %v890_v43, %v889_v42  ;;  %v885_v56 = vsel %vm882_vm14, %v876_v39, %v1650_v26  ;;  %v886_v33 = vsel %vm882_vm14, %v877_v16, %v1651_v25 }
  0xff   : > { %v894_v46 = vpack.c.bf16 %v886_v33, %v885_v56 }
 0x100   : > { %1288 = vmatprep.mubr.msk.bf16.mxu1 %vm995_vm15, %v898_v45 }
 0x101   : > { %1286 = vmatprep.mubr.msk.bf16.mxu0 %vm995_vm15, %v894_v46  ;;  %1065 = vmatmul.mubr.bf16.gmra.mrb[4].mxu1 %v897_v48 }
 0x102   : > { %1049 = vmatmul.mubr.bf16.gmra.mrb[4].mxu0 %v893_v28 }
 0x19c   : > { %v1058_v35 = vpop.f32.mrb[0].mxu1 }
 0x19d   : > { %v1042_v52 = vpop.f32.mrb[0].mxu0  ;;  %v1304_v11 = vpack.c.bf16 %v1058_v35, %v1058_v35  ;;  %v1060_v44 = vpop.f32.mrb[1].mxu1 }
 0x19e   : > { %v1300_v58 = vpack.c.bf16 %v1042_v52, %v1042_v52  ;;  %v1044_v19 = vpop.f32.mrb[1].mxu0  ;;  %v1061_v57 = vpop.f32.mrb[2].mxu1 }
 0x19f   : > { %1110 = vst.msk [vmem:[%s2320_s20 + $0x10] sm:$0xf] %vm1105_vm0, %v1304_v11  ;;  %v1045_v47 = vpop.f32.mrb[2].mxu0  ;;  %v1305_v53 = vpack.c.bf16 %v1061_v57, %v1061_v57  ;;  %v1063_v59 = vpop.f32.mrb[3].mxu1 }
 0x1a0   : > { %1106 = vst.msk [vmem:[%s2320_s20] sm:$0xf] %vm1105_vm0, %v1300_v58  ;;  %v1301_v61 = vpack.c.bf16 %v1045_v47, %v1045_v47  ;;  %v1047_v62 = vpop.f32.mrb[3].mxu0 }
 0x1a1   : > { %1111 = vst.msk [vmem:[%s2320_s20 + $0x14] sm:$0xf] %vm1105_vm0, %v1305_v53 }
 0x1a2   : > { %1107 = vst.msk [vmem:[%s2320_s20 + $0x4] sm:$0xf] %vm1105_vm0, %v1301_v61 }
 0x1d4   : > { %v1066_v63 = vpop.f32.mrb[4].mxu1 }
 0x1d5   : > { %v1050_v21 = vpop.f32.mrb[4].mxu0  ;;  %v1306_v49 = vpack.c.bf16 %v1066_v63, %v1066_v63  ;;  %v1068_v55 = vpop.f32.mrb[5].mxu1 }
 0x1d6   : > { %v1302_v0 = vpack.c.bf16 %v1050_v21, %v1050_v21  ;;  %v1052_v1 = vpop.f32.mrb[5].mxu0  ;;  %v1069_v2 = vpop.f32.mrb[6].mxu1 }
 0x1d7   : > { %1112 = vst.msk [vmem:[%s2320_s20 + $0x18] sm:$0xf] %vm1105_vm0, %v1306_v49  ;;  %v1053_v4 = vpop.f32.mrb[6].mxu0  ;;  %v1307_v6 = vpack.c.bf16 %v1069_v2, %v1069_v2  ;;  %v1071_v50 = vpop.f32.mrb[7].mxu1 }
 0x1d8   : > { %1108 = vst.msk [vmem:[%s2320_s20 + $0x8] sm:$0xf] %vm1105_vm0, %v1302_v0  ;;  %v1303_v7 = vpack.c.bf16 %v1053_v4, %v1053_v4  ;;  %v1055_v8 = vpop.f32.mrb[7].mxu0 }
 0x1d9   : > { %1113 = vst.msk [vmem:[%s2320_s20 + $0x1c] sm:$0xf] %vm1105_vm0, %v1307_v6 }
 0x1da   : > { %1109 = vst.msk [vmem:[%s2320_s20 + $0xc] sm:$0xf] %vm1105_vm0, %v1303_v7 }
 0x1db PF: > { %s12_s9 = sadd.s32 1, %s1675_s9  }
 0x1dc   : > { %p9_p4 = scmp.ge.s32.totalorder %s12_s9, 6  }
 0x1de   :  { %11 = sbr.rel (!%p9_p4) target bundleno = 1 (0x1), region = 61 }

</bundles_post_ra>
